<compile_context>
chip_gen: v5e
topology: v5e:2x2
jax: 0.10.0
libtpu: 0.0.40
codegen_flags: <defaults>
</compile_context>

<pallas_src>
import math
import jax
import jax.numpy as jnp
from jax.experimental import pallas as pl
from jax.experimental.pallas import tpu as pltpu


# ---------------------------------------------------------------------------
# helpers
# ---------------------------------------------------------------------------

def _round_up(x, m):
    return ((x + m - 1) // m) * m


def _pad_gate_axis(w, H, Hp):
    """Pad the leading 4H gate axis to 4Hp, padding each gate block H -> Hp."""
    parts = w.reshape((4, H) + w.shape[1:])
    pad = [(0, 0)] * parts.ndim
    pad[1] = (0, Hp - H)
    parts = jnp.pad(parts, pad)
    return parts.reshape((4 * Hp,) + w.shape[1:])


def _choose_batch_tiling(B):
    """Pad B to a sublane multiple and pick a batch tile.

    Aims for >= 2 tiles when possible so the 'parallel' grid axis feeds both
    v7x TensorCores; tiles capped at 512 rows (review: tb > 128 cuts per-tile
    weight re-streaming / grid overhead when Bp is large)."""
    Bp = _round_up(max(B, 8), 8)
    if Bp <= 8:
        return Bp, Bp
    tb = min(512, _round_up((Bp + 1) // 2, 8))
    Bp = _round_up(Bp, tb)
    return Bp, tb


def _vmem_capacity_bytes():
    try:
        return int(pltpu.get_tpu_info().vmem_capacity_bytes)
    except Exception:
        return 64 * 1024 * 1024          # conservative: v7x per-TensorCore VMEM


# ---------------------------------------------------------------------------
# one-time (per layer) parameter preparation -- hoisted out of the step loop
# ---------------------------------------------------------------------------

def prepare_lstm_params(weight_ih, weight_hh, bias_ih, bias_hh,
                        compute_dtype=jnp.bfloat16):
    """Returns (w_ih_p, w_hh_p, b, dims) ready for the Pallas kernels.

    w_ih_p : (Ip, 4*Hp)  compute_dtype, transposed + gate-wise zero padded
    w_hh_p : (Hp, 4*Hp)  compute_dtype, transposed + gate-wise zero padded
    b      : (1, 4*Hp)   f32, bias_ih + bias_hh (gate-wise zero padded)
    dims   : (I, H, Ip, Hp)
    """
    four_h, I = weight_ih.shape
    H = four_h // 4
    assert weight_hh.shape == (4 * H, H)

    Ip = _round_up(I, 128)               # lane-aligned contraction dims
    Hp = _round_up(H, 128)

    w_ih_p = _pad_gate_axis(weight_ih.astype(jnp.float32), H, Hp)   # (4Hp, I)
    w_hh_p = _pad_gate_axis(weight_hh.astype(jnp.float32), H, Hp)   # (4Hp, H)
    w_ih_p = jnp.pad(w_ih_p, ((0, 0), (0, Ip - I))).T               # (Ip, 4Hp)
    w_hh_p = jnp.pad(w_hh_p, ((0, 0), (0, Hp - H))).T               # (Hp, 4Hp)
    w_ih_p = w_ih_p.astype(compute_dtype)
    w_hh_p = w_hh_p.astype(compute_dtype)

    if bias_ih is None:
        b_sum = jnp.zeros((4 * H,), jnp.float32)
    else:
        b_sum = (bias_ih + bias_hh).astype(jnp.float32)
    b = _pad_gate_axis(b_sum, H, Hp).reshape(1, 4 * Hp)

    return w_ih_p, w_hh_p, b, (I, H, Ip, Hp)


# ---------------------------------------------------------------------------
# kernel: weight-stationary over the time axis, h/c carried in VMEM scratch
# ---------------------------------------------------------------------------

def _lstm_seq_kernel(x_ref, w_ih_ref, w_hh_ref, b_ref, h0_ref, c0_ref,
                     out_ref, h_sc, c_sc):
    t = pl.program_id(1)

    @pl.when(t == 0)
    def _():
        h_sc[...] = h0_ref[...]
        c_sc[...] = c0_ref[...]

    Hp = h_sc.shape[-1]

    x = x_ref[...]                                   # (tb, Ip)  compute dtype
    h = h_sc[...].astype(w_hh_ref.dtype)             # (tb, Hp)  f32 -> bf16

    # Two accumulating MXU passes against the resident weights; bias folded in.
    gates = (jnp.dot(x, w_ih_ref[...], preferred_element_type=jnp.float32)
             + jnp.dot(h, w_hh_ref[...], preferred_element_type=jnp.float32)
             + b_ref[...])                           # (tb, 4Hp) f32

    def _sigmoid(z):                                 # one EUP tanh per gate
        return 0.5 * jnp.tanh(0.5 * z) + 0.5

    ingate     = _sigmoid(gates[:, 0 * Hp:1 * Hp])
    forgetgate = _sigmoid(gates[:, 1 * Hp:2 * Hp])
    cellgate   = jnp.tanh(gates[:, 2 * Hp:3 * Hp])
    outgate    = _sigmoid(gates[:, 3 * Hp:4 * Hp])

    cy = forgetgate * c_sc[...] + ingate * cellgate
    hy = outgate * jnp.tanh(cy)

    h_sc[...] = hy                                   # carry to next timestep
    c_sc[...] = cy

    # Two static, 128-aligned lane-dense stores (no concat temp).
    out_ref[:, 0:Hp] = hy.astype(out_ref.dtype)
    out_ref[:, Hp:2 * Hp] = cy.astype(out_ref.dtype)


# ---------------------------------------------------------------------------
# wrappers
# ---------------------------------------------------------------------------

def lstm_sequence_pallas(xs, h0, c0, prepared_params):
    """Run T LSTM steps with resident weights.

    xs : (T, B, I)   h0, c0 : (B, H)
    Returns (hs, cs), each (T, B, H), matching T iterated torch LSTMCell calls.
    """
    w_ih_p, w_hh_p, b, dims = prepared_params
    I, H, Ip, Hp = dims
    T, B, _ = xs.shape
    assert xs.shape[2] == I and h0.shape == (B, H) and c0.shape == (B, H)

    cdt = w_ih_p.dtype
    Bp, tb = _choose_batch_tiling(B)

    # One-time padding for the whole sequence (no per-step assembly).
    xs_p = jnp.zeros((T, Bp, Ip), cdt).at[:, :B, :I].set(xs.astype(cdt))
    h0_p = jnp.zeros((Bp, Hp), jnp.float32).at[:B, :H].set(h0.astype(jnp.float32))
    c0_p = jnp.zeros((Bp, Hp), jnp.float32).at[:B, :H].set(c0.astype(jnp.float32))

    grid = (Bp // tb, T)

    # VMEM budget (weights counted double-buffered to stay conservative).
    wbytes = jnp.dtype(cdt).itemsize
    f32b = 4
    w_total = (Ip + Hp) * 4 * Hp * wbytes
    est = (2 * w_total                       # resident weight buffers
           + 2 * 4 * Hp * f32b               # bias
           + 2 * tb * Ip * wbytes            # x_t (double-buffered)
           + 2 * 2 * tb * Hp * f32b          # h0 / c0
           + 2 * tb * 2 * Hp * f32b          # [hy|cy] output slab
           + 2 * tb * Hp * f32b)             # h/c carry scratch
    cap = _vmem_capacity_bytes()
    vmem_limit = int(min(0.9 * cap, max(16 * 1024 * 1024, 2 * est)))

    cost = pl.CostEstimate(
        flops=2 * T * Bp * (Ip + Hp) * 4 * Hp,
        transcendentals=5 * T * Bp * Hp,
        bytes_accessed=int(xs_p.size * wbytes + w_ih_p.size * wbytes
                           + w_hh_p.size * wbytes + b.size * f32b
                           + (h0_p.size + c0_p.size) * f32b
                           + T * Bp * 2 * Hp * f32b),
    )

    out = pl.pallas_call(
        _lstm_seq_kernel,
        out_shape=jax.ShapeDtypeStruct((T, Bp, 2 * Hp), jnp.float32),
        grid_spec=pltpu.PrefetchScalarGridSpec(
            num_scalar_prefetch=0,
            grid=grid,
            in_specs=[
                pl.BlockSpec((None, tb, Ip), lambda i, t: (t, i, 0)),   # x_t
                pl.BlockSpec((Ip, 4 * Hp), lambda i, t: (0, 0)),        # W_ih (resident)
                pl.BlockSpec((Hp, 4 * Hp), lambda i, t: (0, 0)),        # W_hh (resident)
                pl.BlockSpec((1, 4 * Hp), lambda i, t: (0, 0)),         # bias (resident)
                pl.BlockSpec((tb, Hp), lambda i, t: (i, 0)),            # h0
                pl.BlockSpec((tb, Hp), lambda i, t: (i, 0)),            # c0
            ],
            out_specs=pl.BlockSpec((None, tb, 2 * Hp), lambda i, t: (t, i, 0)),
            scratch_shapes=[pltpu.VMEM((tb, Hp), jnp.float32),          # h carry
                            pltpu.VMEM((tb, Hp), jnp.float32)],         # c carry
        ),
        compiler_params=pltpu.CompilerParams(
            dimension_semantics=("parallel", "arbitrary"),
            vmem_limit_bytes=vmem_limit,
        ),
        cost_estimate=cost,
    )(xs_p, w_ih_p, w_hh_p, b, h0_p, c0_p)

    hs = out[:, :B, 0:H].astype(xs.dtype)
    cs = out[:, :B, Hp:Hp + H].astype(xs.dtype)
    return hs, cs


def lstm_cell_pallas(x, h, c, prepared_params):
    """Single-step LSTMCell.forward semantics: x:(B,I), h/c:(B,H) -> (hy, cy)."""
    hs, cs = lstm_sequence_pallas(x[None], h, c, prepared_params)
    return hs[0], cs[0]


# ---------------------------------------------------------------------------
# init + pure-JAX reference + demo
# ---------------------------------------------------------------------------

def _init_params(key, input_size, hidden_size, dtype=jnp.float32):
    """Mirrors LSTMCell.reset_parameters (uniform +-stdv)."""
    stdv = 1.0 / math.sqrt(hidden_size)
    k1, k2, k3, k4 = jax.random.split(key, 4)
    weight_ih = jax.random.uniform(k1, (4 * hidden_size, input_size),
                                   minval=-stdv, maxval=stdv, dtype=dtype)
    weight_hh = jax.random.uniform(k2, (4 * hidden_size, hidden_size),
                                   minval=-stdv, maxval=stdv, dtype=dtype)
    bias_ih = jax.random.uniform(k3, (4 * hidden_size,),
                                 minval=-stdv, maxval=stdv, dtype=dtype)
    bias_hh = jax.random.uniform(k4, (4 * hidden_size,),
                                 minval=-stdv, maxval=stdv, dtype=dtype)
    return weight_ih, weight_hh, bias_ih, bias_hh


def _reference_lstm_cell(x, h, c, w_ih, w_hh, b_ih, b_hh):
    gates = x @ w_ih.T + b_ih + h @ w_hh.T + b_hh
    H = h.shape[1]
    i = jax.nn.sigmoid(gates[:, 0 * H:1 * H])
    f = jax.nn.sigmoid(gates[:, 1 * H:2 * H])
    g = jnp.tanh(gates[:, 2 * H:3 * H])
    o = jax.nn.sigmoid(gates[:, 3 * H:4 * H])
    cy = f * c + i * g
    hy = o * jnp.tanh(cy)
    return hy, cy


def _reference_lstm_sequence(xs, h, c, w_ih, w_hh, b_ih, b_hh):
    hs, cs = [], []
    for t in range(xs.shape[0]):
        h, c = _reference_lstm_cell(xs[t], h, c, w_ih, w_hh, b_ih, b_hh)
        hs.append(h)
        cs.append(c)
    return jnp.stack(hs), jnp.stack(cs)


if __name__ == "__main__":
    batch = 2
    input_size = 16
    hidden_size = 32
    seq_len = 8

    key = jax.random.PRNGKey(0)
    kx, kh, kc, kp = jax.random.split(key, 4)

    xs = jax.random.normal(kx, (seq_len, batch, input_size), dtype=jnp.float32)
    h0 = jax.random.normal(kh, (batch, hidden_size), dtype=jnp.float32)
    c0 = jax.random.normal(kc, (batch, hidden_size), dtype=jnp.float32)

    w_ih, w_hh, b_ih, b_hh = _init_params(kp, input_size, hidden_size)

    # One-time per-layer prep (transpose / gate-pad / bias pre-sum / bf16 cast).
    params = prepare_lstm_params(w_ih, w_hh, b_ih, b_hh,
                                 compute_dtype=jnp.bfloat16)

    # 1) Single-step forward (exact module semantics).
    hy, cy = lstm_cell_pallas(xs[0], h0, c0, params)
    jax.block_until_ready((hy, cy))
    hy_ref, cy_ref = _reference_lstm_cell(xs[0], h0, c0, w_ih, w_hh, b_ih, b_hh)
    assert hy.shape == hy_ref.shape and cy.shape == cy_ref.shape
    assert jnp.allclose(hy, hy_ref, atol=3e-2, rtol=3e-2)
    assert jnp.allclose(cy, cy_ref, atol=3e-2, rtol=3e-2)

    # 2) Weight-stationary sequence kernel (the neutraj usage pattern).
    hs, cs = lstm_sequence_pallas(xs, h0, c0, params)
    jax.block_until_ready((hs, cs))
    hs_ref, cs_ref = _reference_lstm_sequence(xs, h0, c0, w_ih, w_hh, b_ih, b_hh)
    assert hs.shape == hs_ref.shape and cs.shape == cs_ref.shape
    assert jnp.allclose(hs, hs_ref, atol=5e-2, rtol=5e-2)
    assert jnp.allclose(cs, cs_ref, atol=5e-2, rtol=5e-2)

    print("KERNEL_OK")
</pallas_src>

<mosaic_0001>
module attributes {stable_mosaic.version = 11 : i64} {
  func.func @_lstm_seq_kernel(%arg0: i32, %arg1: i32, %arg2: memref<1x8x128xbf16, #tpu.memory_space<vmem>>, %arg3: memref<128x512xbf16, #tpu.memory_space<vmem>>, %arg4: memref<128x512xbf16, #tpu.memory_space<vmem>>, %arg5: memref<1x512xf32, #tpu.memory_space<vmem>>, %arg6: memref<8x128xf32, #tpu.memory_space<vmem>>, %arg7: memref<8x128xf32, #tpu.memory_space<vmem>>, %arg8: memref<1x8x256xf32, #tpu.memory_space<vmem>>, %arg9: memref<8x128xf32, #tpu.memory_space<vmem>>, %arg10: memref<8x128xf32, #tpu.memory_space<vmem>>) attributes {dimension_semantics = [#tpu.dimension_semantics<parallel>, #tpu.dimension_semantics<arbitrary>], iteration_bounds = array<i64: 1, 1>, scalar_prefetch = 0 : i64, scratch_operands = 2 : i64, tpu.core_type = #tpu.core_type<tc>, window_params = [{transform_indices = @transform_0, window_bounds = array<i64: 1, 8, 128>}, {pipeline_mode = #tpu.pipeline_mode<synchronous>, transform_indices = @transform_1, window_bounds = array<i64: 128, 512>}, {pipeline_mode = #tpu.pipeline_mode<synchronous>, transform_indices = @transform_2, window_bounds = array<i64: 128, 512>}, {pipeline_mode = #tpu.pipeline_mode<synchronous>, transform_indices = @transform_3, window_bounds = array<i64: 1, 512>}, {transform_indices = @transform_4, window_bounds = array<i64: 8, 128>}, {transform_indices = @transform_5, window_bounds = array<i64: 8, 128>}, {transform_indices = @transform_6, window_bounds = array<i64: 1, 8, 256>}]} {
    %c0_i32 = arith.constant 0 : i32
    %0 = arith.cmpi eq, %arg1, %c0_i32 : i32
    %1 = arith.extui %0 : i1 to i32
    %c0_i32_0 = arith.constant 0 : i32
    %2 = arith.cmpi ne, %1, %c0_i32_0 : i32
    scf.if %2 {
      %c0_32 = arith.constant 0 : index
      %c0_33 = arith.constant 0 : index
      %55 = vector.load %arg6[%c0_32, %c0_33] : memref<8x128xf32, #tpu.memory_space<vmem>>, vector<8x128xf32>
      %c0_34 = arith.constant 0 : index
      %c0_35 = arith.constant 0 : index
      %56 = vector.load %arg9[%c0_34, %c0_35] : memref<8x128xf32, #tpu.memory_space<vmem>>, vector<8x128xf32>
      tpu.vector_store %arg9[%c0_34, %c0_35], %55 {strides = array<i32>} : memref<8x128xf32, #tpu.memory_space<vmem>>, vector<8x128xf32>,
      %c0_36 = arith.constant 0 : index
      %c0_37 = arith.constant 0 : index
      %57 = vector.load %arg7[%c0_36, %c0_37] : memref<8x128xf32, #tpu.memory_space<vmem>>, vector<8x128xf32>
      %c0_38 = arith.constant 0 : index
      %c0_39 = arith.constant 0 : index
      %58 = vector.load %arg10[%c0_38, %c0_39] : memref<8x128xf32, #tpu.memory_space<vmem>>, vector<8x128xf32>
      tpu.vector_store %arg10[%c0_38, %c0_39], %57 {strides = array<i32>} : memref<8x128xf32, #tpu.memory_space<vmem>>, vector<8x128xf32>,
    } else {
    }
    %c0 = arith.constant 0 : index
    %c0_1 = arith.constant 0 : index
    %c0_2 = arith.constant 0 : index
    %3 = vector.load %arg2[%c0, %c0_1, %c0_2] : memref<1x8x128xbf16, #tpu.memory_space<vmem>>, vector<1x8x128xbf16>
    %4 = vector.shape_cast %3 : vector<1x8x128xbf16> to vector<8x128xbf16>
    %c0_3 = arith.constant 0 : index
    %c0_4 = arith.constant 0 : index
    %5 = vector.load %arg9[%c0_3, %c0_4] : memref<8x128xf32, #tpu.memory_space<vmem>>, vector<8x128xf32>
    %6 = arith.truncf %5 : vector<8x128xf32> to vector<8x128xbf16>
    %c0_5 = arith.constant 0 : index
    %c0_6 = arith.constant 0 : index
    %7 = vector.load %arg3[%c0_5, %c0_6] : memref<128x512xbf16, #tpu.memory_space<vmem>>, vector<128x512xbf16>
    %cst = arith.constant dense<0.000000e+00> : vector<8x512xf32>
    %8 = tpu.matmul %4, %7, %cst {dimension_numbers = #tpu.dot_dimension_numbers<[1], [0], [0], [1], [0, 0, 1, 1], [], []>} : vector<8x128xbf16>, vector<128x512xbf16>, vector<8x512xf32> -> vector<8x512xf32>
    %c0_7 = arith.constant 0 : index
    %c0_8 = arith.constant 0 : index
    %9 = vector.load %arg4[%c0_7, %c0_8] : memref<128x512xbf16, #tpu.memory_space<vmem>>, vector<128x512xbf16>
    %cst_9 = arith.constant dense<0.000000e+00> : vector<8x512xf32>
    %10 = tpu.matmul %6, %9, %cst_9 {dimension_numbers = #tpu.dot_dimension_numbers<[1], [0], [0], [1], [0, 0, 1, 1], [], []>} : vector<8x128xbf16>, vector<128x512xbf16>, vector<8x512xf32> -> vector<8x512xf32>
    %11 = arith.addf %8, %10 : vector<8x512xf32>
    %c0_10 = arith.constant 0 : index
    %c0_11 = arith.constant 0 : index
    %12 = vector.load %arg5[%c0_10, %c0_11] : memref<1x512xf32, #tpu.memory_space<vmem>>, vector<1x512xf32>
    %13 = vector.broadcast %12 : vector<1x512xf32> to vector<8x512xf32>
    %14 = arith.addf %11, %13 : vector<8x512xf32>
    %15 = vector.extract_strided_slice %14 {offsets = [0, 0], sizes = [8, 128], strides = [1, 1]} : vector<8x512xf32> to vector<8x128xf32>
    %cst_12 = arith.constant 5.000000e-01 : f32
    %16 = vector.broadcast %cst_12 : f32 to vector<8x128xf32>
    %17 = arith.mulf %16, %15 : vector<8x128xf32>
    %18 = math.tanh %17 : vector<8x128xf32>
    %cst_13 = arith.constant 5.000000e-01 : f32
    %19 = vector.broadcast %cst_13 : f32 to vector<8x128xf32>
    %20 = arith.mulf %19, %18 : vector<8x128xf32>
    %cst_14 = arith.constant 5.000000e-01 : f32
    %21 = vector.broadcast %cst_14 : f32 to vector<8x128xf32>
    %22 = arith.addf %20, %21 : vector<8x128xf32>
    %23 = vector.extract_strided_slice %14 {offsets = [0, 128], sizes = [8, 128], strides = [1, 1]} : vector<8x512xf32> to vector<8x128xf32>
    %cst_15 = arith.constant 5.000000e-01 : f32
    %24 = vector.broadcast %cst_15 : f32 to vector<8x128xf32>
    %25 = arith.mulf %24, %23 : vector<8x128xf32>
    %26 = math.tanh %25 : vector<8x128xf32>
    %cst_16 = arith.constant 5.000000e-01 : f32
    %27 = vector.broadcast %cst_16 : f32 to vector<8x128xf32>
    %28 = arith.mulf %27, %26 : vector<8x128xf32>
    %cst_17 = arith.constant 5.000000e-01 : f32
    %29 = vector.broadcast %cst_17 : f32 to vector<8x128xf32>
    %30 = arith.addf %28, %29 : vector<8x128xf32>
    %31 = vector.extract_strided_slice %14 {offsets = [0, 256], sizes = [8, 128], strides = [1, 1]} : vector<8x512xf32> to vector<8x128xf32>
    %32 = math.tanh %31 : vector<8x128xf32>
    %33 = vector.extract_strided_slice %14 {offsets = [0, 384], sizes = [8, 128], strides = [1, 1]} : vector<8x512xf32> to vector<8x128xf32>
    %cst_18 = arith.constant 5.000000e-01 : f32
    %34 = vector.broadcast %cst_18 : f32 to vector<8x128xf32>
    %35 = arith.mulf %34, %33 : vector<8x128xf32>
    %36 = math.tanh %35 : vector<8x128xf32>
    %cst_19 = arith.constant 5.000000e-01 : f32
    %37 = vector.broadcast %cst_19 : f32 to vector<8x128xf32>
    %38 = arith.mulf %37, %36 : vector<8x128xf32>
    %cst_20 = arith.constant 5.000000e-01 : f32
    %39 = vector.broadcast %cst_20 : f32 to vector<8x128xf32>
    %40 = arith.addf %38, %39 : vector<8x128xf32>
    %c0_21 = arith.constant 0 : index
    %c0_22 = arith.constant 0 : index
    %41 = vector.load %arg10[%c0_21, %c0_22] : memref<8x128xf32, #tpu.memory_space<vmem>>, vector<8x128xf32>
    %42 = arith.mulf %30, %41 : vector<8x128xf32>
    %43 = arith.mulf %22, %32 : vector<8x128xf32>
    %44 = arith.addf %42, %43 : vector<8x128xf32>
    %45 = math.tanh %44 : vector<8x128xf32>
    %46 = arith.mulf %40, %45 : vector<8x128xf32>
    %c0_23 = arith.constant 0 : index
    %c0_24 = arith.constant 0 : index
    %47 = vector.load %arg9[%c0_23, %c0_24] : memref<8x128xf32, #tpu.memory_space<vmem>>, vector<8x128xf32>
    tpu.vector_store %arg9[%c0_23, %c0_24], %46 {strides = array<i32>} : memref<8x128xf32, #tpu.memory_space<vmem>>, vector<8x128xf32>,
    %c0_25 = arith.constant 0 : index
    %c0_26 = arith.constant 0 : index
    %48 = vector.load %arg10[%c0_25, %c0_26] : memref<8x128xf32, #tpu.memory_space<vmem>>, vector<8x128xf32>
    tpu.vector_store %arg10[%c0_25, %c0_26], %44 {strides = array<i32>} : memref<8x128xf32, #tpu.memory_space<vmem>>, vector<8x128xf32>,
    %c0_27 = arith.constant 0 : index
    %c0_28 = arith.constant 0 : index
    %c0_29 = arith.constant 0 : index
    %49 = vector.load %arg8[%c0_27, %c0_28, %c0_29] : memref<1x8x256xf32, #tpu.memory_space<vmem>>, vector<1x8x128xf32>
    %50 = vector.shape_cast %49 : vector<1x8x128xf32> to vector<8x128xf32>
    %51 = vector.shape_cast %46 : vector<8x128xf32> to vector<1x8x128xf32>
    tpu.vector_store %arg8[%c0_27, %c0_28, %c0_29], %51 {strides = array<i32>} : memref<1x8x256xf32, #tpu.memory_space<vmem>>, vector<1x8x128xf32>,
    %c0_30 = arith.constant 0 : index
    %c0_31 = arith.constant 0 : index
    %c128 = arith.constant 128 : index
    %52 = vector.load %arg8[%c0_30, %c0_31, %c128] : memref<1x8x256xf32, #tpu.memory_space<vmem>>, vector<1x8x128xf32>
    %53 = vector.shape_cast %52 : vector<1x8x128xf32> to vector<8x128xf32>
    %54 = vector.shape_cast %44 : vector<8x128xf32> to vector<1x8x128xf32>
    tpu.vector_store %arg8[%c0_30, %c0_31, %c128], %54 {strides = array<i32>} : memref<1x8x256xf32, #tpu.memory_space<vmem>>, vector<1x8x128xf32>,
    return
  }
  func.func @transform_0(%arg0: i32, %arg1: i32) -> (i32, i32, i32) {
    %c0_i32 = arith.constant 0 : i32
    %c0_i32_0 = arith.constant 0 : i32
    return %arg1, %arg0, %c0_i32 : i32, i32, i32
  }
  func.func @transform_1(%arg0: i32, %arg1: i32) -> (i32, i32) {
    %c0_i32 = arith.constant 0 : i32
    %c0_i32_0 = arith.constant 0 : i32
    %c0_i32_1 = arith.constant 0 : i32
    return %c0_i32, %c0_i32_0 : i32, i32
  }
  func.func @transform_2(%arg0: i32, %arg1: i32) -> (i32, i32) {
    %c0_i32 = arith.constant 0 : i32
    %c0_i32_0 = arith.constant 0 : i32
    %c0_i32_1 = arith.constant 0 : i32
    return %c0_i32, %c0_i32_0 : i32, i32
  }
  func.func @transform_3(%arg0: i32, %arg1: i32) -> (i32, i32) {
    %c0_i32 = arith.constant 0 : i32
    %c0_i32_0 = arith.constant 0 : i32
    %c0_i32_1 = arith.constant 0 : i32
    return %c0_i32, %c0_i32_0 : i32, i32
  }
  func.func @transform_4(%arg0: i32, %arg1: i32) -> (i32, i32) {
    %c0_i32 = arith.constant 0 : i32
    %c0_i32_0 = arith.constant 0 : i32
    return %arg0, %c0_i32 : i32, i32
  }
  func.func @transform_5(%arg0: i32, %arg1: i32) -> (i32, i32) {
    %c0_i32 = arith.constant 0 : i32
    %c0_i32_0 = arith.constant 0 : i32
    return %arg0, %c0_i32 : i32, i32
  }
  func.func @transform_6(%arg0: i32, %arg1: i32) -> (i32, i32, i32) {
    %c0_i32 = arith.constant 0 : i32
    %c0_i32_0 = arith.constant 0 : i32
    return %arg1, %arg0, %c0_i32 : i32, i32, i32
  }
}

</mosaic_0001>

<bundles_post_ra>
// kernel: tpu_custom_call.1
= control target key start
LH: loop header
LB: loop body
LE: loop exit
PB: predicated region body
PF: predicated region fallthrough
CT: control target
= control target key end

     0   :  { %11 = vsyncpa [#allocation5], 0  ;;  %s1248_s0 = inlined_call_operand.hbm [shape: bf16[1,8,128], index: 0, kind: input, shape index: {}]   ;;  %s1249_s1 = inlined_call_operand.hbm [shape: bf16[128,512], index: 1, kind: input, shape index: {}]   ;;  %s1250_s2 = inlined_call_operand.hbm [shape: bf16[128,512], index: 2, kind: input, shape index: {}]   ;;  %s1251_s3 = inlined_call_operand.hbm [shape: f32[1,512], index: 3, kind: input, shape index: {}]   ;;  %s1252_s4 = inlined_call_operand.hbm [shape: f32[8,128], index: 4, kind: input, shape index: {}]   ;;  %s1253_s5 = inlined_call_operand.hbm [shape: f32[8,128], index: 5, kind: input, shape index: {}]   ;;  %s1254_s6 = inlined_call_operand.hbm [shape: f32[1,8,256], index: 6, kind: output, shape index: {}]  }
   0x1   :  { %12 = vsyncpa [#allocation8], 0 }
   0x2   :  { %13 = vsyncpa [#allocation11], 0 }
   0x3   :  { %14 = vsyncpa [#allocation14], 0  ;;  %s31_s23 = sshll.u32 %s1249_s1, 4  ;;  %s32_s23 = int_to_ptr.hbm [resolvable:$true] %s31_s23 }
   0x4   :  { %15 = vsyncpa [#allocation6], 0  ;;  %s1183_s24 = smov [#allocation7]   ;;  %s58_s28 = sshll.u32 %s1251_s3, 4  ;;  %s59_s28 = int_to_ptr.hbm [resolvable:$true] %s58_s28 }
   0x5   :  { %s33_s25 = sshll.u32 %s1183_s24, 4  ;;  %s1184_s29 = smov 256   ;;  %s34_s25 = int_to_ptr.vmem [resolvable:$true] %s33_s25 }
   0x6   :  { %s1185_s30 = smov 16   ;;  %s1186_s7 = smov [#allocation10]  }
   0x7   :  { %39 = dma.hbm_to_vmem [thread:$0]  %s32_s23, 4096, %s34_s25, [#allocation8], %s1184_s29, %s1184_s29, %s1185_s30  }
   0x8   :  { %s60_s8 = sshll.u32 %s1186_s7, 4  ;;  %s21_s11 = sshll.u32 %s1248_s0, 4  ;;  %s61_s8 = int_to_ptr.vmem [resolvable:$true] %s60_s8  ;;  %s22_s11 = int_to_ptr.hbm [resolvable:$true] %s21_s11 }
   0x9   :  { %63 = dma.hbm_to_vmem [thread:$0]  %s59_s28, 64, %s61_s8, [#allocation11]  }
   0xa   :  { %s44_s13 = sshll.u32 %s1250_s2, 4  ;;  %s1187_s14 = smov [#allocation4]   ;;  %s45_s13 = int_to_ptr.hbm [resolvable:$true] %s44_s13 }
   0xb   :  { %s23_s15 = sshll.u32 %s1187_s14, 4  ;;  %s1188_s3 = smov [#allocation9]   ;;  %s24_s15 = int_to_ptr.vmem [resolvable:$true] %s23_s15 }
   0xc   :  { %26 = dma.hbm_to_vmem [thread:$0]  %s22_s11, 64, %s24_s15, [#allocation5]  }
   0xd   :  { %s46_s16 = sshll.u32 %s1188_s3, 4  ;;  %s69_s19 = sshll.u32 %s1252_s4, 4  ;;  %s47_s16 = int_to_ptr.vmem [resolvable:$true] %s46_s16  ;;  %s70_s19 = int_to_ptr.hbm [resolvable:$true] %s69_s19 }
   0xe   :  { %52 = dma.hbm_to_vmem [thread:$0]  %s45_s13, 4096, %s47_s16, [#allocation8], %s1184_s29, %s1184_s29, %s1185_s30  }
   0xf   :  { %s80_s21 = sshll.u32 %s1253_s5, 4  ;;  %s1189_s22 = smov [#allocation12]   ;;  %s81_s21 = int_to_ptr.hbm [resolvable:$true] %s80_s21 }
  0x10   :  { %s71_s2 = sshll.u32 %s1189_s22, 4  ;;  %s1190_s23 = smov [#allocation13]   ;;  %s72_s2 = int_to_ptr.vmem [resolvable:$true] %s71_s2 }
  0x11   :  { %74 = dma.hbm_to_vmem [thread:$0]  %s70_s19, 128, %s72_s2, [#allocation11]  }
  0x12   :  { %s82_s24 = sshll.u32 %s1190_s23, 4  ;;  %s83_s24 = int_to_ptr.vmem [resolvable:$true] %s82_s24 }
  0x13   :  { %85 = dma.hbm_to_vmem [thread:$0]  %s81_s21, 128, %s83_s24, [#allocation14]  }
  0x14   :  { %1173 = dma.done.wait [#allocation5], 64  }
  0x15   :  { %1174 = vsyncadd [#allocation5], 4294967232 }
  0x16   :  { %1175 = dma.done.wait [#allocation8], 8192  }
  0x17   :  { %1176 = vsyncadd [#allocation8], 4294959104 }
  0x18   :  { %1177 = dma.done.wait [#allocation11], 192  }
  0x19   :  { %1178 = vsyncadd [#allocation11], 4294967104 }
  0x1a   :  { %1179 = dma.done.wait [#allocation14], 128  }
  0x1b   :  { %1180 = vsyncadd [#allocation14], 4294967168  ;;  %v780_v0 = vld [vmem:[#allocation9 + $0xe0] sm:$0xf]  ;;  %v984_v1 = vld [vmem:[#allocation9 + $0xec] sm:$0xf0] }
  0x1c   :  { %v982_v2 = vld [vmem:[#allocation9 + $0xe4] sm:$0xf]  ;;  %v781_v3 = vor.u32 %v984_v1, %v780_v0  ;;  %v782_v4 = vld [vmem:[#allocation9 + $0xf0] sm:$0xf0]  ;;  %v788_v5 = vld [vmem:[#allocation9 + $0xe8] sm:$0xf] }
  0x1d   :  { %v985_v6 = vld [vmem:[#allocation9 + $0xf4] sm:$0xf0]  ;;  %v785_v7 = vor.u32 %v982_v2, %v782_v4  ;;  %v983_v9 = vld [vmem:[#allocation9 + $0xec] sm:$0xf]  ;;  %v790_v10 = vld [vmem:[#allocation9 + $0xf8] sm:$0xf0] }
  0x1e   :  { %v789_v8 = vor.u32 %v985_v6, %v788_v5  ;;  %v764_v11 = vld [vmem:[#allocation9 + $0xc0] sm:$0xf]  ;;  %345 = vmatpush.bf16.msra.mxu0 %v781_v3  ;;  %v793_v12 = vor.u32 %v983_v9, %v790_v10  ;;  %v980_v13 = vld [vmem:[#allocation9 + $0xcc] sm:$0xf0]  ;;  %v978_v14 = vld [vmem:[#allocation9 + $0xc4] sm:$0xf] }
  0x1f   :  { %v766_v15 = vld [vmem:[#allocation9 + $0xd0] sm:$0xf0]  ;;  %358 = vmatpush.bf16.msra.mxu1 %v785_v7  ;;  %v765_v16 = vor.u32 %v980_v13, %v764_v11  ;;  %v772_v18 = vld [vmem:[#allocation9 + $0xc8] sm:$0xf]  ;;  %v981_v19 = vld [vmem:[#allocation9 + $0xd4] sm:$0xf0] }
  0x20   :  { %371 = vmatpush.bf16.msra.mxu2 %v789_v8  ;;  %v769_v17 = vor.u32 %v978_v14, %v766_v15  ;;  %v979_v20 = vld [vmem:[#allocation9 + $0xcc] sm:$0xf]  ;;  %384 = vmatpush.bf16.msra.mxu3 %v793_v12  ;;  %v773_v21 = vor.u32 %v981_v19, %v772_v18  ;;  %v774_v22 = vld [vmem:[#allocation9 + $0xd8] sm:$0xf0]  ;;  %v748_v23 = vld [vmem:[#allocation9 + $0xa0] sm:$0xf] }
  0x21   :  { %v976_v24 = vld [vmem:[#allocation9 + $0xac] sm:$0xf0]  ;;  %v777_v25 = vor.u32 %v979_v20, %v774_v22  ;;  %v974_v26 = vld [vmem:[#allocation9 + $0xa4] sm:$0xf]  ;;  %v750_v27 = vld [vmem:[#allocation9 + $0xb0] sm:$0xf0] }
  0x22   :  { %v756_v28 = vld [vmem:[#allocation9 + $0xa8] sm:$0xf]  ;;  %346 = vmatpush.bf16.msra.mxu0 %v765_v16  ;;  %v749_v29 = vor.u32 %v976_v24, %v748_v23  ;;  %v977_v30 = vld [vmem:[#allocation9 + $0xb4] sm:$0xf0]  ;;  %v975_v31 = vld [vmem:[#allocation9 + $0xac] sm:$0xf]  ;;  %v753_v33 = vor.u32 %v974_v26, %v750_v27 }
  0x23   :  { %v758_v32 = vld [vmem:[#allocation9 + $0xb8] sm:$0xf0]  ;;  %359 = vmatpush.bf16.msra.mxu1 %v769_v17  ;;  %v757_v34 = vor.u32 %v977_v30, %v756_v28  ;;  %v732_v35 = vld [vmem:[#allocation9 + $0x80] sm:$0xf]  ;;  %v972_v36 = vld [vmem:[#allocation9 + $0x8c] sm:$0xf0] }
  0x24   :  { %372 = vmatpush.bf16.msra.mxu2 %v773_v21  ;;  %v970_v37 = vld [vmem:[#allocation9 + $0x84] sm:$0xf]  ;;  %385 = vmatpush.bf16.msra.mxu3 %v777_v25  ;;  %v761_v38 = vor.u32 %v975_v31, %v758_v32  ;;  %v734_v39 = vld [vmem:[#allocation9 + $0x90] sm:$0xf0]  ;;  %v740_v40 = vld [vmem:[#allocation9 + $0x88] sm:$0xf]  ;;  %v733_v44 = vor.u32 %v972_v36, %v732_v35 }
  0x25   :  { %v973_v41 = vld [vmem:[#allocation9 + $0x94] sm:$0xf0]  ;;  %v971_v42 = vld [vmem:[#allocation9 + $0x8c] sm:$0xf]  ;;  %v742_v43 = vld [vmem:[#allocation9 + $0x98] sm:$0xf0]  ;;  %v737_v45 = vor.u32 %v970_v37, %v734_v39 }
  0x26   :  { %347 = vmatpush.bf16.msra.mxu0 %v749_v29  ;;  %v741_v46 = vor.u32 %v973_v41, %v740_v40  ;;  %v716_v47 = vld [vmem:[#allocation9 + $0x60] sm:$0xf]  ;;  %v968_v48 = vld [vmem:[#allocation9 + $0x6c] sm:$0xf0]  ;;  %v966_v49 = vld [vmem:[#allocation9 + $0x64] sm:$0xf]  ;;  %v745_v50 = vor.u32 %v971_v42, %v742_v43 }
  0x27   :  { %360 = vmatpush.bf16.msra.mxu1 %v753_v33  ;;  %v718_v51 = vld [vmem:[#allocation9 + $0x70] sm:$0xf0]  ;;  %v724_v52 = vld [vmem:[#allocation9 + $0x68] sm:$0xf]  ;;  %v969_v53 = vld [vmem:[#allocation9 + $0x74] sm:$0xf0]  ;;  %v717_v56 = vor.u32 %v968_v48, %v716_v47 }
  0x28   :  { %373 = vmatpush.bf16.msra.mxu2 %v757_v34  ;;  %386 = vmatpush.bf16.msra.mxu3 %v761_v38  ;;  %v967_v54 = vld [vmem:[#allocation9 + $0x6c] sm:$0xf]  ;;  %v726_v55 = vld [vmem:[#allocation9 + $0x78] sm:$0xf0]  ;;  %v721_v57 = vor.u32 %v966_v49, %v718_v51  ;;  %v725_v58 = vor.u32 %v969_v53, %v724_v52  ;;  %v700_v59 = vld [vmem:[#allocation9 + $0x40] sm:$0xf] }
  0x29   :  { %v964_v60 = vld [vmem:[#allocation9 + $0x4c] sm:$0xf0]  ;;  %v962_v61 = vld [vmem:[#allocation9 + $0x44] sm:$0xf]  ;;  %v729_v62 = vor.u32 %v967_v54, %v726_v55  ;;  %v702_v63 = vld [vmem:[#allocation9 + $0x50] sm:$0xf0] }
  0x2a   :  { %348 = vmatpush.bf16.msra.mxu0 %v733_v44  ;;  %v708_v0 = vld [vmem:[#allocation9 + $0x48] sm:$0xf]  ;;  %v965_v1 = vld [vmem:[#allocation9 + $0x54] sm:$0xf0]  ;;  %v963_v2 = vld [vmem:[#allocation9 + $0x4c] sm:$0xf]  ;;  %v701_v4 = vor.u32 %v964_v60, %v700_v59  ;;  %v705_v5 = vor.u32 %v962_v61, %v702_v63 }
  0x2b   :  { %361 = vmatpush.bf16.msra.mxu1 %v737_v45  ;;  %v710_v3 = vld [vmem:[#allocation9 + $0x58] sm:$0xf0]  ;;  %v709_v6 = vor.u32 %v965_v1, %v708_v0  ;;  %v684_v7 = vld [vmem:[#allocation9 + $0x20] sm:$0xf]  ;;  %v960_v8 = vld [vmem:[#allocation9 + $0x2c] sm:$0xf0] }
  0x2c   :  { %374 = vmatpush.bf16.msra.mxu2 %v741_v46  ;;  %387 = vmatpush.bf16.msra.mxu3 %v745_v50  ;;  %v958_v9 = vld [vmem:[#allocation9 + $0x24] sm:$0xf]  ;;  %v713_v10 = vor.u32 %v963_v2, %v710_v3  ;;  %v686_v11 = vld [vmem:[#allocation9 + $0x30] sm:$0xf0]  ;;  %v692_v12 = vld [vmem:[#allocation9 + $0x28] sm:$0xf]  ;;  %v685_v16 = vor.u32 %v960_v8, %v684_v7 }
  0x2d   :  { %v961_v13 = vld [vmem:[#allocation9 + $0x34] sm:$0xf0]  ;;  %v959_v14 = vld [vmem:[#allocation9 + $0x2c] sm:$0xf]  ;;  %v694_v15 = vld [vmem:[#allocation9 + $0x38] sm:$0xf0]  ;;  %v689_v19 = vor.u32 %v958_v9, %v686_v11 }
  0x2e   :  { %349 = vmatpush.bf16.msra.mxu0 %v717_v56  ;;  %v668_v17 = vld [vmem:[#allocation9] sm:$0xf]  ;;  %v956_v18 = vld [vmem:[#allocation9 + $0xc] sm:$0xf0]  ;;  %v693_v20 = vor.u32 %v961_v13, %v692_v12  ;;  %v954_v21 = vld [vmem:[#allocation9 + $0x4] sm:$0xf]  ;;  %v697_v24 = vor.u32 %v959_v14, %v694_v15 }
  0x2f   :  { %362 = vmatpush.bf16.msra.mxu1 %v721_v57  ;;  %v670_v22 = vld [vmem:[#allocation9 + $0x10] sm:$0xf0]  ;;  %v676_v23 = vld [vmem:[#allocation9 + $0x8] sm:$0xf]  ;;  %v957_v25 = vld [vmem:[#allocation9 + $0x14] sm:$0xf0]  ;;  %v669_v31 = vor.u32 %v956_v18, %v668_v17 }
  0x30   :  { %375 = vmatpush.bf16.msra.mxu2 %v725_v58  ;;  %388 = vmatpush.bf16.msra.mxu3 %v729_v62  ;;  %v955_v26 = vld [vmem:[#allocation9 + $0xc] sm:$0xf]  ;;  %v678_v27 = vld [vmem:[#allocation9 + $0x18] sm:$0xf0]  ;;  %v908_v28 = vld [vmem:[#allocation7 + $0xe0] sm:$0xf]  ;;  %v673_v35 = vor.u32 %v954_v21, %v670_v22  ;;  %v677_v36 = vor.u32 %v957_v25, %v676_v23 }
  0x31   :  { %v952_v29 = vld [vmem:[#allocation7 + $0xec] sm:$0xf0]  ;;  %v950_v30 = vld [vmem:[#allocation7 + $0xe4] sm:$0xf]  ;;  %v910_v32 = vld [vmem:[#allocation7 + $0xf0] sm:$0xf0]  ;;  %v681_v40 = vor.u32 %v955_v26, %v678_v27 }
  0x32   :  { %350 = vmatpush.bf16.msra.mxu0 %v701_v4  ;;  %v916_v33 = vld [vmem:[#allocation7 + $0xe8] sm:$0xf]  ;;  %v953_v34 = vld [vmem:[#allocation7 + $0xf4] sm:$0xf0]  ;;  %v951_v37 = vld [vmem:[#allocation7 + $0xec] sm:$0xf]  ;;  %v909_v41 = vor.u32 %v952_v29, %v908_v28  ;;  %v913_v42 = vor.u32 %v950_v30, %v910_v32 }
  0x33   :  { %363 = vmatpush.bf16.msra.mxu1 %v705_v5  ;;  %v918_v38 = vld [vmem:[#allocation7 + $0xf8] sm:$0xf0]  ;;  %v114_v39 = vld [vmem:[#allocation12] sm:$0xff]  ;;  %v917_v43 = vor.u32 %v953_v34, %v916_v33  ;;  %v892_v44 = vld [vmem:[#allocation7 + $0xc0] sm:$0xf]  ;;  %s1191_s4 = smov [#allocation15]  }
  0x34   :  { %376 = vmatpush.bf16.msra.mxu2 %v709_v6  ;;  %389 = vmatpush.bf16.msra.mxu3 %v713_v10  ;;  %v948_v45 = vld [vmem:[#allocation7 + $0xcc] sm:$0xf0]  ;;  %v946_v46 = vld [vmem:[#allocation7 + $0xc4] sm:$0xf]  ;;  %v921_v47 = vor.u32 %v951_v37, %v918_v38  ;;  %v894_v48 = vld [vmem:[#allocation7 + $0xd0] sm:$0xf0]  ;;  %v120_v51 = vpack.c.bf16 %v114_v39, %v114_v39 }
  0x35   :  { %v900_v49 = vld [vmem:[#allocation7 + $0xc8] sm:$0xf]  ;;  %v949_v50 = vld [vmem:[#allocation7 + $0xd4] sm:$0xf0]  ;;  %v947_v52 = vld [vmem:[#allocation7 + $0xcc] sm:$0xf]  ;;  %v893_v54 = vor.u32 %v948_v45, %v892_v44  ;;  %v897_v55 = vor.u32 %v946_v46, %v894_v48 }
  0x36   :  { %351 = vmatpush.bf16.msra.mxu0 %v685_v16  ;;  %v902_v53 = vld [vmem:[#allocation7 + $0xd8] sm:$0xf0]  ;;  %v901_v56 = vor.u32 %v949_v50, %v900_v49  ;;  %v876_v57 = vld [vmem:[#allocation7 + $0xa0] sm:$0xf]  ;;  %v944_v58 = vld [vmem:[#allocation7 + $0xac] sm:$0xf0] }
  0x37   :  { %364 = vmatpush.bf16.msra.mxu1 %v689_v19  ;;  %v942_v59 = vld [vmem:[#allocation7 + $0xa4] sm:$0xf]  ;;  %v905_v60 = vor.u32 %v947_v52, %v902_v53  ;;  %v878_v61 = vld [vmem:[#allocation7 + $0xb0] sm:$0xf0]  ;;  %v884_v62 = vld [vmem:[#allocation7 + $0xa8] sm:$0xf]  ;;  %v877_v2 = vor.u32 %v944_v58, %v876_v57 }
  0x38   :  { %377 = vmatpush.bf16.msra.mxu2 %v693_v20  ;;  %390 = vmatpush.bf16.msra.mxu3 %v697_v24  ;;  %v945_v63 = vld [vmem:[#allocation7 + $0xb4] sm:$0xf0]  ;;  %v943_v0 = vld [vmem:[#allocation7 + $0xac] sm:$0xf]  ;;  %v886_v1 = vld [vmem:[#allocation7 + $0xb8] sm:$0xf0]  ;;  %v881_v3 = vor.u32 %v942_v59, %v878_v61 }
  0x39   :  { %v885_v4 = vor.u32 %v945_v63, %v884_v62  ;;  %v860_v5 = vld [vmem:[#allocation7 + $0x80] sm:$0xf]  ;;  %v940_v6 = vld [vmem:[#allocation7 + $0x8c] sm:$0xf0]  ;;  %v938_v7 = vld [vmem:[#allocation7 + $0x84] sm:$0xf]  ;;  %v889_v8 = vor.u32 %v943_v0, %v886_v1 }
  0x3a   :  { %352 = vmatpush.bf16.msra.mxu0 %v669_v31  ;;  %v862_v9 = vld [vmem:[#allocation7 + $0x90] sm:$0xf0]  ;;  %v868_v10 = vld [vmem:[#allocation7 + $0x88] sm:$0xf]  ;;  %v941_v11 = vld [vmem:[#allocation7 + $0x94] sm:$0xf0]  ;;  %v861_v14 = vor.u32 %v940_v6, %v860_v5 }
  0x3b   :  { %365 = vmatpush.bf16.msra.mxu1 %v673_v35  ;;  %v939_v12 = vld [vmem:[#allocation7 + $0x8c] sm:$0xf]  ;;  %v870_v13 = vld [vmem:[#allocation7 + $0x98] sm:$0xf0]  ;;  %v865_v15 = vor.u32 %v938_v7, %v862_v9  ;;  %v869_v16 = vor.u32 %v941_v11, %v868_v10  ;;  %v844_v17 = vld [vmem:[#allocation7 + $0x60] sm:$0xf] }
  0x3c   :  { %378 = vmatpush.bf16.msra.mxu2 %v677_v36  ;;  %391 = vmatpush.bf16.msra.mxu3 %v681_v40  ;;  %v936_v18 = vld [vmem:[#allocation7 + $0x6c] sm:$0xf0]  ;;  %v934_v19 = vld [vmem:[#allocation7 + $0x64] sm:$0xf]  ;;  %v873_v20 = vor.u32 %v939_v12, %v870_v13  ;;  %v846_v21 = vld [vmem:[#allocation7 + $0x70] sm:$0xf0] }
  0x3d   :  { %353 = vmatmul.bf16.vlgmr.msra.gmra.mxu0 %v120_v51  ;;  %v852_v22 = vld [vmem:[#allocation7 + $0x68] sm:$0xf]  ;;  %v937_v23 = vld [vmem:[#allocation7 + $0x74] sm:$0xf0]  ;;  %v935_v24 = vld [vmem:[#allocation7 + $0x6c] sm:$0xf]  ;;  %v845_v26 = vor.u32 %v936_v18, %v844_v17  ;;  %v849_v27 = vor.u32 %v934_v19, %v846_v21 }
  0x3e   :  { %557 = vmatpush.bf16.msrb.mxu0 %v909_v41  ;;  %366 = vmatmul.bf16.vlgmr.msra.gmra.mxu1 %v120_v51  ;;  %v854_v25 = vld [vmem:[#allocation7 + $0x78] sm:$0xf0]  ;;  %v853_v28 = vor.u32 %v937_v23, %v852_v22  ;;  %v828_v29 = vld [vmem:[#allocation7 + $0x40] sm:$0xf]  ;;  %v932_v30 = vld [vmem:[#allocation7 + $0x4c] sm:$0xf0] }
  0x3f   :  { %570 = vmatpush.bf16.msrb.mxu1 %v913_v42  ;;  %379 = vmatmul.bf16.vlgmr.msra.gmra.mxu2 %v120_v51  ;;  %v930_v31 = vld [vmem:[#allocation7 + $0x44] sm:$0xf]  ;;  %v857_v32 = vor.u32 %v935_v24, %v854_v25  ;;  %v830_v33 = vld [vmem:[#allocation7 + $0x50] sm:$0xf0]  ;;  %v836_v34 = vld [vmem:[#allocation7 + $0x48] sm:$0xf]  ;;  %v829_v38 = vor.u32 %v932_v30, %v828_v29 }
  0x40   :  { %583 = vmatpush.bf16.msrb.mxu2 %v917_v43  ;;  %596 = vmatpush.bf16.msrb.mxu3 %v921_v47  ;;  %v933_v35 = vld [vmem:[#allocation7 + $0x54] sm:$0xf0]  ;;  %v931_v36 = vld [vmem:[#allocation7 + $0x4c] sm:$0xf]  ;;  %v838_v37 = vld [vmem:[#allocation7 + $0x58] sm:$0xf0]  ;;  %v833_v39 = vor.u32 %v930_v31, %v830_v33 }
  0x41   :  { %392 = vmatmul.bf16.vlgmr.msra.gmra.mxu3 %v120_v51  ;;  %v837_v40 = vor.u32 %v933_v35, %v836_v34  ;;  %v812_v41 = vld [vmem:[#allocation7 + $0x20] sm:$0xf]  ;;  %v928_v42 = vld [vmem:[#allocation7 + $0x2c] sm:$0xf0]  ;;  %v926_v43 = vld [vmem:[#allocation7 + $0x24] sm:$0xf]  ;;  %v841_v44 = vor.u32 %v931_v36, %v838_v37 }
  0x42   :  { %558 = vmatpush.bf16.msrb.mxu0 %v893_v54  ;;  %v814_v45 = vld [vmem:[#allocation7 + $0x30] sm:$0xf0]  ;;  %v820_v46 = vld [vmem:[#allocation7 + $0x28] sm:$0xf]  ;;  %v929_v47 = vld [vmem:[#allocation7 + $0x34] sm:$0xf0]  ;;  %v813_v50 = vor.u32 %v928_v42, %v812_v41 }
  0x43   :  { %571 = vmatpush.bf16.msrb.mxu1 %v897_v55  ;;  %v927_v48 = vld [vmem:[#allocation7 + $0x2c] sm:$0xf]  ;;  %v822_v49 = vld [vmem:[#allocation7 + $0x38] sm:$0xf0]  ;;  %v817_v51 = vor.u32 %v926_v43, %v814_v45  ;;  %v821_v52 = vor.u32 %v929_v47, %v820_v46  ;;  %v796_v53 = vld [vmem:[#allocation7] sm:$0xf] }
  0x44   :  { %584 = vmatpush.bf16.msrb.mxu2 %v901_v56  ;;  %597 = vmatpush.bf16.msrb.mxu3 %v905_v60  ;;  %v924_v54 = vld [vmem:[#allocation7 + $0xc] sm:$0xf0]  ;;  %v922_v55 = vld [vmem:[#allocation7 + $0x4] sm:$0xf]  ;;  %v825_v56 = vor.u32 %v927_v48, %v822_v49  ;;  %v798_v57 = vld [vmem:[#allocation7 + $0x10] sm:$0xf0] }
  0x45   :  { %v804_v58 = vld [vmem:[#allocation7 + $0x8] sm:$0xf]  ;;  %v925_v59 = vld [vmem:[#allocation7 + $0x14] sm:$0xf0]  ;;  %v923_v60 = vld [vmem:[#allocation7 + $0xc] sm:$0xf]  ;;  %v797_v62 = vor.u32 %v924_v54, %v796_v53  ;;  %v801_v63 = vor.u32 %v922_v55, %v798_v57 }
  0x46   :  { %559 = vmatpush.bf16.msrb.mxu0 %v877_v2  ;;  %v806_v61 = vld [vmem:[#allocation7 + $0x18] sm:$0xf0]  ;;  %v805_v0 = vor.u32 %v925_v59, %v804_v58  ;;  %v609_v11 = vld [vmem:[#allocation10] sm:$0xf]  ;;  %s651_s5 = sshll.u32 %s1191_s4, 4  ;;  %s653_s27 = sshll.u32 %s1254_s6, 4  ;;  %s652_s5 = int_to_ptr.vmem [resolvable:$true] %s651_s5  ;;  %s654_s27 = int_to_ptr.hbm [resolvable:$true] %s653_s27 }
  0x47   :  { %572 = vmatpush.bf16.msrb.mxu1 %v881_v3  ;;  %v809_v1 = vor.u32 %v923_v60, %v806_v61  ;;  %v118_v2 = vld [vmem:[#allocation4] sm:$0xf]  ;;  %v611_v12 = vperm.slane %v609_v11, 0  ;;  %v613_v22 = vperm.slane %v609_v11, 2  ;;  %v614_v24 = vperm.slane %v609_v11, 3 }
  0x48   :  { %585 = vmatpush.bf16.msrb.mxu2 %v885_v4  ;;  %598 = vmatpush.bf16.msrb.mxu3 %v889_v8 }
  0x4a   :  { %560 = vmatpush.bf16.msrb.mxu0 %v861_v14  ;;  %v612_v14 = vperm.slane %v609_v11, 1 }
  0x4b   :  { %573 = vmatpush.bf16.msrb.mxu1 %v865_v15 }
  0x4c   :  { %586 = vmatpush.bf16.msrb.mxu2 %v869_v16  ;;  %599 = vmatpush.bf16.msrb.mxu3 %v873_v20 }
  0x4e   :  { %561 = vmatpush.bf16.msrb.mxu0 %v845_v26 }
  0x4f   :  { %574 = vmatpush.bf16.msrb.mxu1 %v849_v27 }
  0x50   :  { %587 = vmatpush.bf16.msrb.mxu2 %v853_v28  ;;  %600 = vmatpush.bf16.msrb.mxu3 %v857_v32 }
  0x52   :  { %562 = vmatpush.bf16.msrb.mxu0 %v829_v38 }
  0x53   :  { %575 = vmatpush.bf16.msrb.mxu1 %v833_v39  ;;  %v116_v39 = vld [vmem:[#allocation13] sm:$0xff] }
  0x54   :  { %588 = vmatpush.bf16.msrb.mxu2 %v837_v40  ;;  %601 = vmatpush.bf16.msrb.mxu3 %v841_v44 }
  0x56   :  { %563 = vmatpush.bf16.msrb.mxu0 %v813_v50 }
  0x57   :  { %576 = vmatpush.bf16.msrb.mxu1 %v817_v51 }
  0x58   :  { %589 = vmatpush.bf16.msrb.mxu2 %v821_v52  ;;  %602 = vmatpush.bf16.msrb.mxu3 %v825_v56 }
  0x5a   :  { %564 = vmatpush.bf16.msrb.mxu0 %v797_v62 }
  0x5b   :  { %577 = vmatpush.bf16.msrb.mxu1 %v801_v63 }
  0x5c   :  { %590 = vmatpush.bf16.msrb.mxu2 %v805_v0  ;;  %603 = vmatpush.bf16.msrb.mxu3 %v809_v1 }
  0x5d   :  { %565 = vmatmul.bf16.vlgmr.msrb.gmra.mxu0 %v118_v2 }
  0x5e   :  { %578 = vmatmul.bf16.vlgmr.msrb.gmra.mxu1 %v118_v2 }
  0x5f   :  { %591 = vmatmul.bf16.vlgmr.msrb.gmra.mxu2 %v118_v2  ;;  %604 = vmatmul.bf16.vlgmr.msrb.gmra.mxu3 %v118_v2 }
  0xba   :  { %v354_v3 = vpop.f32.mrf.mxu0 }
  0xbb   :  { %v367_v4 = vpop.f32.mrf.mxu1 }
  0xc2   :  { %v380_v5 = vpop.f32.mrf.mxu2  ;;  %v356_v6 = vpop.f32.mrf.mxu0 }
  0xc3   :  { %v369_v8 = vpop.f32.mrf.mxu1 }
  0xc4   :  { %v393_v7 = vpop.f32.mrf.mxu3 }
  0xca   :  { %v382_v9 = vpop.f32.mrf.mxu2 }
  0xcc   :  { %v395_v10 = vpop.f32.mrf.mxu3 }
  0xda   :  { %v566_v13 = vpop.f32.mrf.mxu0 }
  0xdb   :  { %v567_v15 = vadd.f32 %v566_v13, %v354_v3  ;;  %v579_v16 = vpop.f32.mrf.mxu1 }
  0xdc   :  { %v580_v17 = vadd.f32 %v579_v16, %v367_v4 }
  0xdd   :  { %v619_v18 = vadd.f32 %v611_v12, %v567_v15 }
  0xde   :  { %v620_v19 = vadd.f32 %v612_v14, %v580_v17 }
  0xdf   :  { %v623_v20 = vmul.f32 0.5, %v619_v18 }
  0xe0   :  { %v627_v21 = vmul.f32 0.5, %v620_v19 }
  0xe1   :  { %995 = vtanh.f32 %v623_v20 }
  0xe2   :  { %v592_v23 = vpop.f32.mrf.mxu2  ;;  %997 = vtanh.f32 %v627_v21  ;;  %v605_v26 = vpop.f32.mrf.mxu3 }
  0xe3   :  { %v593_v25 = vadd.f32 %v592_v23, %v380_v5  ;;  %v568_v27 = vpop.f32.mrf.mxu0  ;;  %v606_v28 = vadd.f32 %v605_v26, %v393_v7  ;;  %v581_v29 = vpop.f32.mrf.mxu1 }
  0xe5   :  { %v621_v30 = vadd.f32 %v613_v22, %v593_v25  ;;  %v622_v31 = vadd.f32 %v614_v24, %v606_v28 }
  0xe7   :  { %999 = vtanh.f32 %v621_v30  ;;  %v996_v32 = vpop.eup %995  ;;  %v632_v33 = vmul.f32 0.5, %v622_v31 }
  0xe8   :  { %v998_v34 = vpop.eup %997  ;;  %v625_v35 = vmul.f32 0.5, %v996_v32 }
  0xe9   :  { %v629_v36 = vmul.f32 0.5, %v998_v34  ;;  %1001 = vtanh.f32 %v632_v33 }
  0xea   :  { %v594_v37 = vpop.f32.mrf.mxu2  ;;  %v626_v38 = vadd.f32 0.5, %v625_v35  ;;  %v607_v40 = vpop.f32.mrf.mxu3 }
  0xeb   :  { %v630_v41 = vadd.f32 0.5, %v629_v36 }
  0xed   :  { %v1000_v42 = vpop.eup %999  ;;  %v637_v43 = vmul.f32 %v630_v41, %v116_v39 }
  0xee   :  { %v638_v44 = vmul.f32 %v1000_v42, %v626_v38 }
  0xef   :  { %v1002_v45 = vpop.eup %1001 }
  0xf0   :  { %v639_v46 = vadd.f32 %v638_v44, %v637_v43  ;;  %v634_v47 = vmul.f32 0.5, %v1002_v45 }
  0xf2   :  { %1003 = vtanh.f32 %v639_v46  ;;  %645 = vst [vmem:[#allocation15 + $0x8] sm:$0xff] %v639_v46  ;;  %v635_v48 = vadd.f32 0.5, %v634_v47 }
  0xf8   :  { %v1004_v49 = vpop.eup %1003 }
  0xf9   :  { %v641_v50 = vmul.f32 %v1004_v49, %v635_v48 }
  0xfb   :  { %644 = vst [vmem:[#allocation15] sm:$0xff] %v641_v50 }
  0xfc   :  { %656 = dma.vmem_to_hbm [thread:$0]  %s652_s5, 256, %s654_s27, [#allocation6]  }
  0xfd   :  { %1181 = dma.done.wait [#allocation6], 256  }
  0xfe   :  { %1182 = vsyncadd [#allocation6], 4294967040 }
  0xff   :  { %661 = vsyncpa [#allocation5], 1 }
 0x100   :  { %662 = vsyncpa [#allocation8], 1 }
 0x101   :  { %663 = vsyncpa [#allocation11], 1 }
 0x102   :  { %664 = vsyncpa [#allocation14], 1 }
 0x103   :  { %665 = vsyncpa [#allocation6], 1 }

</bundles_post_ra>
